<compile_context>
chip_gen: v7x
topology: tpu7x:2x2x1
jax: 0.10.0
libtpu: 0.0.40
codegen_flags: <defaults>
</compile_context>

<pallas_src>
import jax
import jax.numpy as jnp
from jax.experimental import pallas as pl
from jax.experimental.pallas import tpu as pltpu


def _round_up(x: int, m: int) -> int:
    return ((x + m - 1) // m) * m


def _cdiv(a: int, b: int) -> int:
    return (a + b - 1) // b


def _pick_hw_chunk(hw: int) -> int:
    # Chunk must divide HW, be a multiple of 8 (sublane group), and keep the
    # unrolled reduction loop short.  Falls back to the whole spatial extent.
    for c in range(8, hw, 8):
        if hw % c == 0 and hw // c <= 16:
            return c
    return hw


def _make_decoder_kernel(hw: int, hw_chunk: int):
    if hw % hw_chunk != 0:
        hw_chunk = hw
    n_chunks = hw // hw_chunk

    def kernel(x_ref, wt_ref, o_ref, acc_ref):
        # x_ref:   (tN, HW, tC)  channels-last activation tile (full spatial extent)
        # wt_ref:  (tC, NCp)     transposed Linear weight tile (original dtype)
        # o_ref:   (tN, NCp) f32 output tile (resident across the C grid axis)
        # acc_ref: (tN, NCp) f32 VMEM accumulator scratch
        c = pl.program_id(1)

        @pl.when(c == 0)
        def _init():
            acc_ref[...] = jnp.zeros_like(acc_ref)

        tn = x_ref.shape[0]
        tc = x_ref.shape[2]

        # Spatial sum over HW (sublane axis), accumulated in f32.  Chunked with
        # static slices so the upcast never materializes the whole tile in vregs.
        pooled = jnp.zeros((tn, tc), jnp.float32)
        for j in range(n_chunks):
            blk = x_ref[:, j * hw_chunk:(j + 1) * hw_chunk, :]
            pooled = pooled + jnp.sum(blk.astype(jnp.float32), axis=1)

        # Channel contraction on the MXU at the weight's dtype; f32 accumulation.
        acc_ref[...] += jnp.dot(pooled.astype(wt_ref.dtype), wt_ref[...],
                                preferred_element_type=jnp.float32)

        @pl.when(c == pl.num_programs(1) - 1)
        def _finalize():
            o_ref[...] = acc_ref[...].astype(o_ref.dtype)

    return kernel


def resnet_decoder(x, weight, bias, *, x_vmem_budget_bytes=24 << 20):
    """Forward of ResNetDecoder.

    x:      (N, C, H, W) NCHW activations (PyTorch layout)
    weight: (n_classes, C) Linear weight
    bias:   (n_classes,)   Linear bias
    Returns (N, n_classes).
    """
    N, C, H, W = x.shape
    n_classes = weight.shape[0]
    HW = H * W
    itemsize = jnp.dtype(x.dtype).itemsize
    hw_sub = _round_up(HW, 8)                 # sublane-padded spatial extent

    NCp = _round_up(n_classes, 128)           # lane-dense output columns

    # ---- batch tile: multiple of 8 (or the full batch when N < 8); split so
    #      grid[0] >= 2 when possible (keeps both v7x TensorCores busy; harmless
    #      on single-TC v5e/v6e).
    if N < 8:
        tN = N
    else:
        tN = min(128, _round_up(N, 8))
        while _cdiv(N, tN) < 2 and tN > 8:
            tN = _round_up(max(8, tN // 2), 8)
        # Shrink further if even a 128-wide channel tile would blow the budget.
        min_tc = min(C, 128)
        while tN > 8 and 2 * tN * hw_sub * min_tc * itemsize > x_vmem_budget_bytes:
            tN = _round_up(max(8, tN // 2), 8)

    # ---- channel tile: lane axis; prefer a multiple of 128 that divides C
    #      exactly (no HBM copy of x) and fits the double-buffer budget.
    per_chan_bytes = 2 * tN * hw_sub * itemsize          # per channel, 2 buffers
    tc_budget = max(1, x_vmem_budget_bytes // per_chan_bytes)

    tC = 0
    k = (min(tc_budget, C) // 128) * 128
    while k >= 128:
        if C % k == 0:
            tC = k
            break
        k -= 128
    pad_C = 0
    if tC == 0:
        if C <= tc_budget:
            tC = C                                        # single full-C block
        else:
            # Rare: no lane-aligned divisor of C fits the budget.  Fall back to
            # a zero-padded channel axis (exact: zero channels contribute 0).
            # TODO(synk): tile HW with an extra inner reduction axis instead of
            # padding C for very large spatial extents.
            tC = max(128, (tc_budget // 128) * 128)
            pad_C = _round_up(C, tC) - C
    Cp = C + pad_C

    # ---- glue: NCHW -> (N, HW, C) channels-last.  In a real pipeline the
    #      activations from NHWC TPU convs are already in this layout.
    x_nhwc = jnp.transpose(x, (0, 2, 3, 1)).reshape(N, HW, C)
    if pad_C:
        x_nhwc = jnp.pad(x_nhwc, ((0, 0), (0, 0), (0, pad_C)))

    # Transposed weight, padded to lane-dense columns; dtype preserved.
    w_t = jnp.pad(weight.T, ((0, pad_C), (0, NCp - n_classes)))

    grid = (_cdiv(N, tN), Cp // tC)

    kernel = _make_decoder_kernel(HW, _pick_hw_chunk(HW))

    cost = pl.CostEstimate(
        flops=N * C * HW + 2 * N * Cp * NCp,
        transcendentals=0,
        bytes_accessed=(N * HW * C * itemsize
                        + grid[0] * Cp * NCp * jnp.dtype(w_t.dtype).itemsize
                        + N * NCp * 4),
    )

    out = pl.pallas_call(
        kernel,
        out_shape=jax.ShapeDtypeStruct((N, NCp), jnp.float32),
        grid_spec=pltpu.PrefetchScalarGridSpec(
            num_scalar_prefetch=0,
            grid=grid,
            in_specs=[
                pl.BlockSpec((tN, HW, tC), lambda n, c: (n, 0, c)),
                pl.BlockSpec((tC, NCp), lambda n, c: (c, 0)),
            ],
            out_specs=pl.BlockSpec((tN, NCp), lambda n, c: (n, 0)),
            scratch_shapes=[pltpu.VMEM((tN, NCp), jnp.float32)],
        ),
        compiler_params=pltpu.CompilerParams(
            dimension_semantics=("parallel", "arbitrary"),
            vmem_limit_bytes=48 * 1024 * 1024,
        ),
        cost_estimate=cost,
    )(x_nhwc, w_t)

    # Mean scale (commutes with the contraction) and bias, in f32, outside the
    # kernel; O(N x n_classes).
    logits = out[:, :n_classes] * jnp.float32(1.0 / HW) + bias.astype(jnp.float32)
    return logits.astype(jnp.result_type(x.dtype, weight.dtype))


def reference_decoder(x, weight, bias):
    """Pure-JAX reference matching the PyTorch forward."""
    pooled = jnp.mean(x.astype(jnp.float32), axis=(2, 3))   # AdaptiveAvgPool2d((1,1)) + view
    return pooled @ weight.T.astype(jnp.float32) + bias.astype(jnp.float32)


if __name__ == "__main__":
    # Small shapes consistent with the module: batch=2, in_features(C)=4,
    # spatial 16x16, n_classes=8.
    N, C, H, W = 2, 4, 16, 16
    n_classes = 8

    key = jax.random.PRNGKey(0)
    kx, kw, kb = jax.random.split(key, 3)

    x = jax.random.normal(kx, (N, C, H, W), dtype=jnp.float32)
    bound = 1.0 / jnp.sqrt(C)
    weight = jax.random.uniform(kw, (n_classes, C), minval=-bound, maxval=bound,
                                dtype=jnp.float32)
    bias = jax.random.uniform(kb, (n_classes,), minval=-bound, maxval=bound,
                              dtype=jnp.float32)

    out = jax.block_until_ready(resnet_decoder(x, weight, bias))
    ref = reference_decoder(x, weight, bias)

    assert out.shape == (N, n_classes)
    assert jnp.allclose(out, ref, atol=1e-5, rtol=1e-5), "mismatch vs reference"
    print("KERNEL_OK")
</pallas_src>

<mosaic_0001>
module attributes {stable_mosaic.version = 11 : i64} {
  func.func @kernel(%arg0: i32, %arg1: i32, %arg2: memref<2x256x4xf32, #tpu.memory_space<vmem>>, %arg3: memref<4x128xf32, #tpu.memory_space<vmem>>, %arg4: memref<2x128xf32, #tpu.memory_space<vmem>>, %arg5: memref<2x128xf32, #tpu.memory_space<vmem>>) attributes {dimension_semantics = [#tpu.dimension_semantics<parallel>, #tpu.dimension_semantics<arbitrary>], iteration_bounds = array<i64: 1, 1>, scalar_prefetch = 0 : i64, scratch_operands = 1 : i64, tpu.core_type = #tpu.core_type<tc>, window_params = [{transform_indices = @transform_0, window_bounds = array<i64: 2, 256, 4>}, {transform_indices = @transform_1, window_bounds = array<i64: 4, 128>}, {transform_indices = @transform_2, window_bounds = array<i64: 2, 128>}]} {
    %c0_i32 = arith.constant 0 : i32
    %0 = arith.cmpi eq, %arg1, %c0_i32 : i32
    %1 = arith.extui %0 : i1 to i32
    %c0_i32_0 = arith.constant 0 : i32
    %2 = arith.cmpi ne, %1, %c0_i32_0 : i32
    scf.if %2 {
      %cst_58 = arith.constant 0.000000e+00 : f32
      %60 = vector.broadcast %cst_58 : f32 to vector<2x128xf32>
      %c0_59 = arith.constant 0 : index
      %c0_60 = arith.constant 0 : index
      %61 = vector.load %arg5[%c0_59, %c0_60] : memref<2x128xf32, #tpu.memory_space<vmem>>, vector<2x128xf32>
      tpu.vector_store %arg5[%c0_59, %c0_60], %60 {strides = array<i32>} : memref<2x128xf32, #tpu.memory_space<vmem>>, vector<2x128xf32>,
    } else {
    }
    %cst = arith.constant 0.000000e+00 : f32
    %3 = vector.broadcast %cst : f32 to vector<2x4xf32>
    %c0 = arith.constant 0 : index
    %c0_1 = arith.constant 0 : index
    %c0_2 = arith.constant 0 : index
    %4 = vector.load %arg2[%c0, %c0_1, %c0_2] : memref<2x256x4xf32, #tpu.memory_space<vmem>>, vector<2x16x4xf32>
    %cst_3 = arith.constant dense<0.000000e+00> : vector<2x4xf32>
    %5 = vector.multi_reduction <add>, %4, %cst_3 [1] : vector<2x16x4xf32> to vector<2x4xf32>
    %6 = arith.addf %3, %5 : vector<2x4xf32>
    %c0_4 = arith.constant 0 : index
    %c16 = arith.constant 16 : index
    %c0_5 = arith.constant 0 : index
    %7 = vector.load %arg2[%c0_4, %c16, %c0_5] : memref<2x256x4xf32, #tpu.memory_space<vmem>>, vector<2x16x4xf32>
    %cst_6 = arith.constant dense<0.000000e+00> : vector<2x4xf32>
    %8 = vector.multi_reduction <add>, %7, %cst_6 [1] : vector<2x16x4xf32> to vector<2x4xf32>
    %9 = arith.addf %6, %8 : vector<2x4xf32>
    %c0_7 = arith.constant 0 : index
    %c32 = arith.constant 32 : index
    %c0_8 = arith.constant 0 : index
    %10 = vector.load %arg2[%c0_7, %c32, %c0_8] : memref<2x256x4xf32, #tpu.memory_space<vmem>>, vector<2x16x4xf32>
    %cst_9 = arith.constant dense<0.000000e+00> : vector<2x4xf32>
    %11 = vector.multi_reduction <add>, %10, %cst_9 [1] : vector<2x16x4xf32> to vector<2x4xf32>
    %12 = arith.addf %9, %11 : vector<2x4xf32>
    %c0_10 = arith.constant 0 : index
    %c48 = arith.constant 48 : index
    %c0_11 = arith.constant 0 : index
    %13 = vector.load %arg2[%c0_10, %c48, %c0_11] : memref<2x256x4xf32, #tpu.memory_space<vmem>>, vector<2x16x4xf32>
    %cst_12 = arith.constant dense<0.000000e+00> : vector<2x4xf32>
    %14 = vector.multi_reduction <add>, %13, %cst_12 [1] : vector<2x16x4xf32> to vector<2x4xf32>
    %15 = arith.addf %12, %14 : vector<2x4xf32>
    %c0_13 = arith.constant 0 : index
    %c64 = arith.constant 64 : index
    %c0_14 = arith.constant 0 : index
    %16 = vector.load %arg2[%c0_13, %c64, %c0_14] : memref<2x256x4xf32, #tpu.memory_space<vmem>>, vector<2x16x4xf32>
    %cst_15 = arith.constant dense<0.000000e+00> : vector<2x4xf32>
    %17 = vector.multi_reduction <add>, %16, %cst_15 [1] : vector<2x16x4xf32> to vector<2x4xf32>
    %18 = arith.addf %15, %17 : vector<2x4xf32>
    %c0_16 = arith.constant 0 : index
    %c80 = arith.constant 80 : index
    %c0_17 = arith.constant 0 : index
    %19 = vector.load %arg2[%c0_16, %c80, %c0_17] : memref<2x256x4xf32, #tpu.memory_space<vmem>>, vector<2x16x4xf32>
    %cst_18 = arith.constant dense<0.000000e+00> : vector<2x4xf32>
    %20 = vector.multi_reduction <add>, %19, %cst_18 [1] : vector<2x16x4xf32> to vector<2x4xf32>
    %21 = arith.addf %18, %20 : vector<2x4xf32>
    %c0_19 = arith.constant 0 : index
    %c96 = arith.constant 96 : index
    %c0_20 = arith.constant 0 : index
    %22 = vector.load %arg2[%c0_19, %c96, %c0_20] : memref<2x256x4xf32, #tpu.memory_space<vmem>>, vector<2x16x4xf32>
    %cst_21 = arith.constant dense<0.000000e+00> : vector<2x4xf32>
    %23 = vector.multi_reduction <add>, %22, %cst_21 [1] : vector<2x16x4xf32> to vector<2x4xf32>
    %24 = arith.addf %21, %23 : vector<2x4xf32>
    %c0_22 = arith.constant 0 : index
    %c112 = arith.constant 112 : index
    %c0_23 = arith.constant 0 : index
    %25 = vector.load %arg2[%c0_22, %c112, %c0_23] : memref<2x256x4xf32, #tpu.memory_space<vmem>>, vector<2x16x4xf32>
    %cst_24 = arith.constant dense<0.000000e+00> : vector<2x4xf32>
    %26 = vector.multi_reduction <add>, %25, %cst_24 [1] : vector<2x16x4xf32> to vector<2x4xf32>
    %27 = arith.addf %24, %26 : vector<2x4xf32>
    %c0_25 = arith.constant 0 : index
    %c128 = arith.constant 128 : index
    %c0_26 = arith.constant 0 : index
    %28 = vector.load %arg2[%c0_25, %c128, %c0_26] : memref<2x256x4xf32, #tpu.memory_space<vmem>>, vector<2x16x4xf32>
    %cst_27 = arith.constant dense<0.000000e+00> : vector<2x4xf32>
    %29 = vector.multi_reduction <add>, %28, %cst_27 [1] : vector<2x16x4xf32> to vector<2x4xf32>
    %30 = arith.addf %27, %29 : vector<2x4xf32>
    %c0_28 = arith.constant 0 : index
    %c144 = arith.constant 144 : index
    %c0_29 = arith.constant 0 : index
    %31 = vector.load %arg2[%c0_28, %c144, %c0_29] : memref<2x256x4xf32, #tpu.memory_space<vmem>>, vector<2x16x4xf32>
    %cst_30 = arith.constant dense<0.000000e+00> : vector<2x4xf32>
    %32 = vector.multi_reduction <add>, %31, %cst_30 [1] : vector<2x16x4xf32> to vector<2x4xf32>
    %33 = arith.addf %30, %32 : vector<2x4xf32>
    %c0_31 = arith.constant 0 : index
    %c160 = arith.constant 160 : index
    %c0_32 = arith.constant 0 : index
    %34 = vector.load %arg2[%c0_31, %c160, %c0_32] : memref<2x256x4xf32, #tpu.memory_space<vmem>>, vector<2x16x4xf32>
    %cst_33 = arith.constant dense<0.000000e+00> : vector<2x4xf32>
    %35 = vector.multi_reduction <add>, %34, %cst_33 [1] : vector<2x16x4xf32> to vector<2x4xf32>
    %36 = arith.addf %33, %35 : vector<2x4xf32>
    %c0_34 = arith.constant 0 : index
    %c176 = arith.constant 176 : index
    %c0_35 = arith.constant 0 : index
    %37 = vector.load %arg2[%c0_34, %c176, %c0_35] : memref<2x256x4xf32, #tpu.memory_space<vmem>>, vector<2x16x4xf32>
    %cst_36 = arith.constant dense<0.000000e+00> : vector<2x4xf32>
    %38 = vector.multi_reduction <add>, %37, %cst_36 [1] : vector<2x16x4xf32> to vector<2x4xf32>
    %39 = arith.addf %36, %38 : vector<2x4xf32>
    %c0_37 = arith.constant 0 : index
    %c192 = arith.constant 192 : index
    %c0_38 = arith.constant 0 : index
    %40 = vector.load %arg2[%c0_37, %c192, %c0_38] : memref<2x256x4xf32, #tpu.memory_space<vmem>>, vector<2x16x4xf32>
    %cst_39 = arith.constant dense<0.000000e+00> : vector<2x4xf32>
    %41 = vector.multi_reduction <add>, %40, %cst_39 [1] : vector<2x16x4xf32> to vector<2x4xf32>
    %42 = arith.addf %39, %41 : vector<2x4xf32>
    %c0_40 = arith.constant 0 : index
    %c208 = arith.constant 208 : index
    %c0_41 = arith.constant 0 : index
    %43 = vector.load %arg2[%c0_40, %c208, %c0_41] : memref<2x256x4xf32, #tpu.memory_space<vmem>>, vector<2x16x4xf32>
    %cst_42 = arith.constant dense<0.000000e+00> : vector<2x4xf32>
    %44 = vector.multi_reduction <add>, %43, %cst_42 [1] : vector<2x16x4xf32> to vector<2x4xf32>
    %45 = arith.addf %42, %44 : vector<2x4xf32>
    %c0_43 = arith.constant 0 : index
    %c224 = arith.constant 224 : index
    %c0_44 = arith.constant 0 : index
    %46 = vector.load %arg2[%c0_43, %c224, %c0_44] : memref<2x256x4xf32, #tpu.memory_space<vmem>>, vector<2x16x4xf32>
    %cst_45 = arith.constant dense<0.000000e+00> : vector<2x4xf32>
    %47 = vector.multi_reduction <add>, %46, %cst_45 [1] : vector<2x16x4xf32> to vector<2x4xf32>
    %48 = arith.addf %45, %47 : vector<2x4xf32>
    %c0_46 = arith.constant 0 : index
    %c240 = arith.constant 240 : index
    %c0_47 = arith.constant 0 : index
    %49 = vector.load %arg2[%c0_46, %c240, %c0_47] : memref<2x256x4xf32, #tpu.memory_space<vmem>>, vector<2x16x4xf32>
    %cst_48 = arith.constant dense<0.000000e+00> : vector<2x4xf32>
    %50 = vector.multi_reduction <add>, %49, %cst_48 [1] : vector<2x16x4xf32> to vector<2x4xf32>
    %51 = arith.addf %48, %50 : vector<2x4xf32>
    %c0_49 = arith.constant 0 : index
    %c0_50 = arith.constant 0 : index
    %52 = vector.load %arg5[%c0_49, %c0_50] : memref<2x128xf32, #tpu.memory_space<vmem>>, vector<2x128xf32>
    %c0_51 = arith.constant 0 : index
    %c0_52 = arith.constant 0 : index
    %53 = vector.load %arg3[%c0_51, %c0_52] : memref<4x128xf32, #tpu.memory_space<vmem>>, vector<4x128xf32>
    %cst_53 = arith.constant dense<0.000000e+00> : vector<2x128xf32>
    %54 = tpu.matmul %51, %53, %cst_53 {dimension_numbers = #tpu.dot_dimension_numbers<[1], [0], [0], [1], [0, 0, 1, 1], [], []>} : vector<2x4xf32>, vector<4x128xf32>, vector<2x128xf32> -> vector<2x128xf32>
    %55 = arith.addf %52, %54 : vector<2x128xf32>
    %c0_54 = arith.constant 0 : index
    %c0_55 = arith.constant 0 : index
    %56 = vector.load %arg5[%c0_54, %c0_55] : memref<2x128xf32, #tpu.memory_space<vmem>>, vector<2x128xf32>
    tpu.vector_store %arg5[%c0_54, %c0_55], %55 {strides = array<i32>} : memref<2x128xf32, #tpu.memory_space<vmem>>, vector<2x128xf32>,
    %c0_i32_56 = arith.constant 0 : i32
    %57 = arith.cmpi eq, %arg1, %c0_i32_56 : i32
    %58 = arith.extui %57 : i1 to i32
    %c0_i32_57 = arith.constant 0 : i32
    %59 = arith.cmpi ne, %58, %c0_i32_57 : i32
    scf.if %59 {
      %c0_58 = arith.constant 0 : index
      %c0_59 = arith.constant 0 : index
      %60 = vector.load %arg5[%c0_58, %c0_59] : memref<2x128xf32, #tpu.memory_space<vmem>>, vector<2x128xf32>
      %c0_60 = arith.constant 0 : index
      %c0_61 = arith.constant 0 : index
      %61 = vector.load %arg4[%c0_60, %c0_61] : memref<2x128xf32, #tpu.memory_space<vmem>>, vector<2x128xf32>
      tpu.vector_store %arg4[%c0_60, %c0_61], %60 {strides = array<i32>} : memref<2x128xf32, #tpu.memory_space<vmem>>, vector<2x128xf32>,
    } else {
    }
    return
  }
  func.func @transform_0(%arg0: i32, %arg1: i32) -> (i32, i32, i32) {
    %c0_i32 = arith.constant 0 : i32
    %c0_i32_0 = arith.constant 0 : i32
    return %arg0, %c0_i32, %arg1 : i32, i32, i32
  }
  func.func @transform_1(%arg0: i32, %arg1: i32) -> (i32, i32) {
    %c0_i32 = arith.constant 0 : i32
    %c0_i32_0 = arith.constant 0 : i32
    return %arg1, %c0_i32 : i32, i32
  }
  func.func @transform_2(%arg0: i32, %arg1: i32) -> (i32, i32) {
    %c0_i32 = arith.constant 0 : i32
    %c0_i32_0 = arith.constant 0 : i32
    return %arg0, %c0_i32 : i32, i32
  }
}

</mosaic_0001>

<bundles_post_ra>
// kernel: tpu_custom_call.1
= control target key start
LH: loop header
LB: loop body
LE: loop exit
PB: predicated region body
PF: predicated region fallthrough
CT: control target
= control target key end

     0   :  { %vm410_vm0 = vcmask 1043456   ;;  %v541_v2 = vmov 0.0   ;;  %vm542_vm1 = vmmov 0   ;;  %vm21_vm2 = vcmask 31744   ;;  %s831_s0 = inlined_call_operand.vmem [shape: f32[2,256,4], index: 0, kind: input, shape index: {}]   ;;  %s832_s1 = inlined_call_operand.vmem [shape: f32[4,128], index: 1, kind: input, shape index: {}]   ;;  %s833_s2 = inlined_call_operand.hbm [shape: f32[2,128], index: 2, kind: output, shape index: {}]  }
   0x1   :  { %v403_v0 = vld [vmem:[%s832_s1] sm:$0xf]  ;;  %16 = vst [vmem:[#allocation2] sm:$0x3] %v541_v2  ;;  %509 = vmatprep.subr.mxu0 %v541_v2  ;;  %511 = vmatprep.mubr.msk.f32.mxu0 %vm542_vm1, %v541_v2  ;;  %v18_v3 = vld [vmem:[%s831_s0 + $0x8] sm:$0xff]  ;;  %v42_v10 = vld [vmem:[%s831_s0 + $0x10] sm:$0xff] }
   0x2   :  { %v17_v1 = vld [vmem:[%s831_s0] sm:$0xff]  ;;  %v20_v5 = vld [vmem:[%s831_s0 + $0x108] sm:$0xff]  ;;  %510 = vmatpush3.msk.msra.mxu0 %vm410_vm0, %v403_v0  ;;  %v23_v7 = vsel %vm21_vm2, %v18_v3, 0.0  ;;  %v43_v11 = vld [vmem:[%s831_s0 + $0x18] sm:$0xff]  ;;  %v46_v16 = vsel %vm21_vm2, %v42_v10, 0.0 }
   0x3   :  { %v19_v4 = vld [vmem:[%s831_s0 + $0x100] sm:$0xff]  ;;  %v22_v6 = vsel %vm21_vm2, %v17_v1, 0.0  ;;  %v32_v9 = vsel %vm21_vm2, %v20_v5, 0.0  ;;  %v44_v14 = vld [vmem:[%s831_s0 + $0x110] sm:$0xff]  ;;  %v45_v15 = vld [vmem:[%s831_s0 + $0x118] sm:$0xff]  ;;  %v47_v17 = vsel %vm21_vm2, %v43_v11, 0.0 }
   0x4   :  { %v31_v8 = vsel %vm21_vm2, %v19_v4, 0.0  ;;  %v24_v12 = vadd.f32 %v23_v7, %v22_v6  ;;  %v66_v18 = vld [vmem:[%s831_s0 + $0x20] sm:$0xff]  ;;  %v48_v19 = vadd.f32 %v47_v17, %v46_v16  ;;  %v55_v20 = vsel %vm21_vm2, %v44_v14, 0.0  ;;  %v67_v22 = vld [vmem:[%s831_s0 + $0x28] sm:$0xff]  ;;  %v90_v30 = vld [vmem:[%s831_s0 + $0x30] sm:$0xff] }
   0x5   :  { %v33_v13 = vadd.f32 %v32_v9, %v31_v8  ;;  %v56_v21 = vsel %vm21_vm2, %v45_v15, 0.0  ;;  %v68_v23 = vld [vmem:[%s831_s0 + $0x120] sm:$0xff]  ;;  %v69_v24 = vld [vmem:[%s831_s0 + $0x128] sm:$0xff]  ;;  %v70_v25 = vsel %vm21_vm2, %v66_v18, 0.0  ;;  %v71_v29 = vsel %vm21_vm2, %v67_v22, 0.0  ;;  %v91_v31 = vld [vmem:[%s831_s0 + $0x38] sm:$0xff] }
   0x6   :  { %v25_v26 = vrot.slane %v24_v12, 4  ;;  %v57_v28 = vadd.f32 %v56_v21, %v55_v20  ;;  %v49_v32 = vrot.slane %v48_v19, 4  ;;  %v72_v33 = vadd.f32 %v71_v29, %v70_v25  ;;  %v92_v40 = vld [vmem:[%s831_s0 + $0x130] sm:$0xff]  ;;  %v93_v49 = vld [vmem:[%s831_s0 + $0x138] sm:$0xff]  ;;  %v114_v6 = vld [vmem:[%s831_s0 + $0x40] sm:$0xff] }
   0x7   :  { %v34_v27 = vrot.slane %v33_v13, 4  ;;  %v79_v34 = vsel %vm21_vm2, %v68_v23, 0.0  ;;  %v80_v35 = vsel %vm21_vm2, %v69_v24, 0.0  ;;  %v94_v43 = vsel %vm21_vm2, %v90_v30, 0.0  ;;  %v115_v7 = vld [vmem:[%s831_s0 + $0x48] sm:$0xff]  ;;  %v116_v16 = vld [vmem:[%s831_s0 + $0x140] sm:$0xff] }
   0x8   :  { %v26_v36 = vadd.f32 %v25_v26, %v24_v12  ;;  %v58_v38 = vrot.slane %v57_v28, 4  ;;  %v81_v39 = vadd.f32 %v80_v35, %v79_v34  ;;  %v50_v41 = vadd.f32 %v49_v32, %v48_v19  ;;  %v117_v19 = vld [vmem:[%s831_s0 + $0x148] sm:$0xff]  ;;  %v138_v26 = vld [vmem:[%s831_s0 + $0x50] sm:$0xff] }
   0x9   :  { %v35_v37 = vadd.f32 %v34_v27, %v33_v13  ;;  %v73_v42 = vrot.slane %v72_v33, 4  ;;  %v95_v44 = vsel %vm21_vm2, %v91_v31, 0.0  ;;  %v103_v53 = vsel %vm21_vm2, %v92_v40, 0.0  ;;  %v139_v31 = vld [vmem:[%s831_s0 + $0x58] sm:$0xff]  ;;  %v140_v32 = vld [vmem:[%s831_s0 + $0x150] sm:$0xff] }
   0xa   :  { %v27_v45 = vrot.slane %v26_v36, 2  ;;  %v59_v47 = vadd.f32 %v58_v38, %v57_v28  ;;  %v82_v48 = vrot.slane %v81_v39, 4  ;;  %v51_v50 = vrot.slane %v50_v41, 2 }
   0xb   :  { %v36_v46 = vrot.slane %v35_v37, 2  ;;  %v74_v51 = vadd.f32 %v73_v42, %v72_v33  ;;  %v96_v52 = vadd.f32 %v95_v44, %v94_v43  ;;  %v104_v61 = vsel %vm21_vm2, %v93_v49, 0.0  ;;  %v162_v42 = vld [vmem:[%s831_s0 + $0x60] sm:$0xff] }
   0xc   :  { %v28_v54 = vadd.f32 %v27_v45, %v26_v36  ;;  %v60_v56 = vrot.slane %v59_v47, 2  ;;  %v83_v57 = vadd.f32 %v82_v48, %v81_v39  ;;  %v52_v58 = vadd.f32 %v51_v50, %v50_v41 }
   0xd   :  { %v37_v55 = vadd.f32 %v36_v46, %v35_v37  ;;  %v75_v59 = vrot.slane %v74_v51, 2  ;;  %v97_v60 = vrot.slane %v96_v52, 4  ;;  %v105_v5 = vadd.f32 %v104_v61, %v103_v53  ;;  %v141_v37 = vld [vmem:[%s831_s0 + $0x158] sm:$0xff] }
   0xe   :  { %v29_v62 = vrot.slane %v28_v54, 1  ;;  %v61_v0 = vadd.f32 %v60_v56, %v59_v47  ;;  %v84_v1 = vrot.slane %v83_v57, 2  ;;  %v53_v2 = vrot.slane %v52_v58, 1  ;;  %v163_v47 = vld [vmem:[%s831_s0 + $0x68] sm:$0xff] }
   0xf   :  { %v38_v63 = vrot.slane %v37_v55, 1  ;;  %v76_v3 = vadd.f32 %v75_v59, %v74_v51  ;;  %v98_v4 = vadd.f32 %v97_v60, %v96_v52  ;;  %v106_v15 = vrot.slane %v105_v5, 4  ;;  %v164_v52 = vld [vmem:[%s831_s0 + $0x160] sm:$0xff] }
  0x10   :  { %v30_v8 = vadd.f32 %v29_v62, %v28_v54  ;;  %v62_v10 = vrot.slane %v61_v0, 1  ;;  %v85_v11 = vadd.f32 %v84_v1, %v83_v57  ;;  %v54_v12 = vadd.f32 %v53_v2, %v52_v58 }
  0x11   :  { %v39_v9 = vadd.f32 %v38_v63, %v37_v55  ;;  %v77_v13 = vrot.slane %v76_v3, 1  ;;  %v99_v14 = vrot.slane %v98_v4, 2  ;;  %v118_v20 = vsel %vm21_vm2, %v114_v6, 0.0 }
  0x12   :  { %v63_v17 = vadd.f32 %v62_v10, %v61_v0  ;;  %v86_v18 = vrot.slane %v85_v11, 1  ;;  %v119_v21 = vsel %vm21_vm2, %v115_v7, 0.0  ;;  %v64_v22 = vadd.f32 %v54_v12, %v30_v8 }
  0x13   :  { %v78_v23 = vadd.f32 %v77_v13, %v76_v3  ;;  %v100_v24 = vadd.f32 %v99_v14, %v98_v4  ;;  %v107_v25 = vadd.f32 %v106_v15, %v105_v5  ;;  %v120_v29 = vadd.f32 %v119_v21, %v118_v20 }
  0x14   :  { %v65_v27 = vadd.f32 %v63_v17, %v39_v9  ;;  %v87_v28 = vadd.f32 %v86_v18, %v85_v11  ;;  %v127_v30 = vsel %vm21_vm2, %v116_v16, 0.0  ;;  %v128_v36 = vsel %vm21_vm2, %v117_v19, 0.0 }
  0x15   :  { %v88_v33 = vadd.f32 %v78_v23, %v64_v22  ;;  %v101_v34 = vrot.slane %v100_v24, 1  ;;  %v108_v35 = vrot.slane %v107_v25, 2  ;;  %v121_v39 = vrot.slane %v120_v29, 4 }
  0x16   :  { %v89_v38 = vadd.f32 %v87_v28, %v65_v27  ;;  %v129_v40 = vadd.f32 %v128_v36, %v127_v30  ;;  %v142_v41 = vsel %vm21_vm2, %v138_v26, 0.0  ;;  %v143_v45 = vsel %vm21_vm2, %v139_v31, 0.0 }
  0x17   :  { %v102_v43 = vadd.f32 %v101_v34, %v100_v24  ;;  %v109_v44 = vadd.f32 %v108_v35, %v107_v25  ;;  %v151_v46 = vsel %vm21_vm2, %v140_v32, 0.0  ;;  %v122_v48 = vadd.f32 %v121_v39, %v120_v29 }
  0x18   :  { %v130_v49 = vrot.slane %v129_v40, 4  ;;  %v144_v50 = vadd.f32 %v143_v45, %v142_v41  ;;  %v152_v51 = vsel %vm21_vm2, %v141_v37, 0.0 }
  0x19   :  { %7 = vsyncpa [#allocation4], 0  ;;  %v110_v53 = vrot.slane %v109_v44, 1  ;;  %v112_v54 = vadd.f32 %v102_v43, %v88_v33  ;;  %v153_v55 = vadd.f32 %v152_v51, %v151_v46  ;;  %v165_v56 = vld [vmem:[%s831_s0 + $0x168] sm:$0xff]  ;;  %v166_v57 = vsel %vm21_vm2, %v162_v42, 0.0  ;;  %v186_v2 = vld [vmem:[%s831_s0 + $0x70] sm:$0xff] }
  0x1a   :  { %v123_v58 = vrot.slane %v122_v48, 2  ;;  %v131_v59 = vadd.f32 %v130_v49, %v129_v40  ;;  %v145_v60 = vrot.slane %v144_v50, 4  ;;  %v167_v61 = vsel %vm21_vm2, %v163_v47, 0.0  ;;  %v187_v7 = vld [vmem:[%s831_s0 + $0x78] sm:$0xff]  ;;  %v188_v15 = vld [vmem:[%s831_s0 + $0x170] sm:$0xff]  ;;  %v210_v34 = vld [vmem:[%s831_s0 + $0x80] sm:$0xff] }
  0x1b   :  { %v111_v62 = vadd.f32 %v110_v53, %v109_v44  ;;  %v154_v63 = vrot.slane %v153_v55, 4  ;;  %v168_v0 = vadd.f32 %v167_v61, %v166_v57  ;;  %v175_v1 = vsel %vm21_vm2, %v164_v52, 0.0  ;;  %v189_v24 = vld [vmem:[%s831_s0 + $0x178] sm:$0xff]  ;;  %v211_v39 = vld [vmem:[%s831_s0 + $0x88] sm:$0xff]  ;;  %v212_v47 = vld [vmem:[%s831_s0 + $0x180] sm:$0xff] }
  0x1c   :  { %v124_v3 = vadd.f32 %v123_v58, %v122_v48  ;;  %v132_v4 = vrot.slane %v131_v59, 2  ;;  %v146_v5 = vadd.f32 %v145_v60, %v144_v50  ;;  %v176_v6 = vsel %vm21_vm2, %v165_v56, 0.0  ;;  %v213_v48 = vld [vmem:[%s831_s0 + $0x188] sm:$0xff]  ;;  %v234_v58 = vld [vmem:[%s831_s0 + $0x90] sm:$0xff] }
  0x1d   :  { %v113_v8 = vadd.f32 %v111_v62, %v89_v38  ;;  %v155_v9 = vadd.f32 %v154_v63, %v153_v55  ;;  %v169_v10 = vrot.slane %v168_v0, 4  ;;  %v177_v11 = vadd.f32 %v176_v6, %v175_v1 }
  0x1e   :  { %v125_v12 = vrot.slane %v124_v3, 1  ;;  %v133_v13 = vadd.f32 %v132_v4, %v131_v59  ;;  %v147_v14 = vrot.slane %v146_v5, 2  ;;  %v190_v16 = vsel %vm21_vm2, %v186_v2, 0.0  ;;  %v235_v59 = vld [vmem:[%s831_s0 + $0x98] sm:$0xff] }
  0x1f   :  { %v156_v17 = vrot.slane %v155_v9, 2  ;;  %v170_v18 = vadd.f32 %v169_v10, %v168_v0  ;;  %v178_v19 = vrot.slane %v177_v11, 4  ;;  %v191_v20 = vsel %vm21_vm2, %v187_v7, 0.0  ;;  %v237_v4 = vld [vmem:[%s831_s0 + $0x198] sm:$0xff] }
  0x20   :  { %v126_v21 = vadd.f32 %v125_v12, %v124_v3  ;;  %v134_v22 = vrot.slane %v133_v13, 1  ;;  %v148_v23 = vadd.f32 %v147_v14, %v146_v5  ;;  %v192_v25 = vadd.f32 %v191_v20, %v190_v16  ;;  %v236_v3 = vld [vmem:[%s831_s0 + $0x190] sm:$0xff]  ;;  %v259_v14 = vld [vmem:[%s831_s0 + $0xa8] sm:$0xff] }
  0x21   :  { %v157_v26 = vadd.f32 %v156_v17, %v155_v9  ;;  %v171_v27 = vrot.slane %v170_v18, 2  ;;  %v179_v28 = vadd.f32 %v178_v19, %v177_v11  ;;  %v199_v29 = vsel %vm21_vm2, %v188_v15, 0.0 }
  0x22   :  { %v135_v30 = vadd.f32 %v134_v22, %v133_v13  ;;  %v136_v31 = vadd.f32 %v126_v21, %v112_v54  ;;  %v149_v32 = vrot.slane %v148_v23, 1  ;;  %v193_v33 = vrot.slane %v192_v25, 4  ;;  %v258_v13 = vld [vmem:[%s831_s0 + $0xa0] sm:$0xff] }
  0x23   :  { %v158_v35 = vrot.slane %v157_v26, 1  ;;  %v172_v36 = vadd.f32 %v171_v27, %v170_v18  ;;  %v180_v37 = vrot.slane %v179_v28, 2  ;;  %v200_v38 = vsel %vm21_vm2, %v189_v24, 0.0  ;;  %v261_v24 = vld [vmem:[%s831_s0 + $0x1a8] sm:$0xff] }
  0x24   :  { %v137_v40 = vadd.f32 %v135_v30, %v113_v8  ;;  %v150_v41 = vadd.f32 %v149_v32, %v148_v23  ;;  %v194_v42 = vadd.f32 %v193_v33, %v192_v25  ;;  %v201_v43 = vadd.f32 %v200_v38, %v199_v29  ;;  %v260_v23 = vld [vmem:[%s831_s0 + $0x1a0] sm:$0xff]  ;;  %v282_v33 = vld [vmem:[%s831_s0 + $0xb0] sm:$0xff] }
  0x25   :  { %v159_v44 = vadd.f32 %v158_v35, %v157_v26  ;;  %v173_v45 = vrot.slane %v172_v36, 1  ;;  %v181_v46 = vadd.f32 %v180_v37, %v179_v28  ;;  %v214_v49 = vsel %vm21_vm2, %v210_v34, 0.0 }
  0x26   :  { %v160_v50 = vadd.f32 %v150_v41, %v136_v31  ;;  %v195_v51 = vrot.slane %v194_v42, 2  ;;  %v202_v52 = vrot.slane %v201_v43, 4  ;;  %v215_v53 = vsel %vm21_vm2, %v211_v39, 0.0 }
  0x27   :  { %v161_v54 = vadd.f32 %v159_v44, %v137_v40  ;;  %v174_v55 = vadd.f32 %v173_v45, %v172_v36  ;;  %v182_v56 = vrot.slane %v181_v46, 1  ;;  %v216_v57 = vadd.f32 %v215_v53, %v214_v49 }
  0x28   :  { %v196_v60 = vadd.f32 %v195_v51, %v194_v42  ;;  %v203_v61 = vadd.f32 %v202_v52, %v201_v43  ;;  %v223_v62 = vsel %vm21_vm2, %v212_v47, 0.0  ;;  %v224_v63 = vsel %vm21_vm2, %v213_v48, 0.0  ;;  %v283_v42 = vld [vmem:[%s831_s0 + $0xb8] sm:$0xff]  ;;  %v284_v43 = vld [vmem:[%s831_s0 + $0x1b0] sm:$0xff] }
  0x29   :  { %v183_v0 = vadd.f32 %v182_v56, %v181_v46  ;;  %v217_v1 = vrot.slane %v216_v57, 4  ;;  %v225_v2 = vadd.f32 %v224_v63, %v223_v62  ;;  %v238_v7 = vsel %vm21_vm2, %v234_v58, 0.0  ;;  %v285_v52 = vld [vmem:[%s831_s0 + $0x1b8] sm:$0xff] }
  0x2a   :  { %v197_v5 = vrot.slane %v196_v60, 1  ;;  %v204_v6 = vrot.slane %v203_v61, 2  ;;  %v239_v8 = vsel %vm21_vm2, %v235_v59, 0.0  ;;  %v184_v9 = vadd.f32 %v174_v55, %v160_v50 }
  0x2b   :  { %v218_v10 = vadd.f32 %v217_v1, %v216_v57  ;;  %v226_v11 = vrot.slane %v225_v2, 4  ;;  %v240_v12 = vadd.f32 %v239_v8, %v238_v7  ;;  %v185_v15 = vadd.f32 %v183_v0, %v161_v54 }
  0x2c   :  { %v205_v16 = vadd.f32 %v204_v6, %v203_v61  ;;  %v247_v17 = vsel %vm21_vm2, %v236_v3, 0.0  ;;  %v248_v18 = vsel %vm21_vm2, %v237_v4, 0.0  ;;  %v198_v25 = vadd.f32 %v197_v5, %v196_v60  ;;  %v306_v61 = vld [vmem:[%s831_s0 + $0xc0] sm:$0xff] }
  0x2d   :  { %v219_v19 = vrot.slane %v218_v10, 2  ;;  %v227_v20 = vadd.f32 %v226_v11, %v225_v2  ;;  %v241_v21 = vrot.slane %v240_v12, 4  ;;  %v249_v22 = vadd.f32 %v248_v18, %v247_v17  ;;  %v307_v2 = vld [vmem:[%s831_s0 + $0xc8] sm:$0xff] }
  0x2e   :  { %v206_v26 = vrot.slane %v205_v16, 1  ;;  %v262_v27 = vsel %vm21_vm2, %v258_v13, 0.0  ;;  %v263_v28 = vsel %vm21_vm2, %v259_v14, 0.0  ;;  %v271_v36 = vsel %vm21_vm2, %v260_v23, 0.0  ;;  %v309_v11 = vld [vmem:[%s831_s0 + $0x1c8] sm:$0xff] }
  0x2f   :  { %v220_v29 = vadd.f32 %v219_v19, %v218_v10  ;;  %v228_v30 = vrot.slane %v227_v20, 2  ;;  %v242_v31 = vadd.f32 %v241_v21, %v240_v12  ;;  %v250_v32 = vrot.slane %v249_v22, 4  ;;  %v308_v10 = vld [vmem:[%s831_s0 + $0x1c0] sm:$0xff]  ;;  %v330_v21 = vld [vmem:[%s831_s0 + $0xd0] sm:$0xff] }
  0x30   :  { %v207_v34 = vadd.f32 %v206_v26, %v205_v16  ;;  %v264_v35 = vadd.f32 %v263_v28, %v262_v27  ;;  %v272_v37 = vsel %vm21_vm2, %v261_v24, 0.0  ;;  %v208_v44 = vadd.f32 %v198_v25, %v184_v9 }
  0x31   :  { %v221_v38 = vrot.slane %v220_v29, 1  ;;  %v229_v39 = vadd.f32 %v228_v30, %v227_v20  ;;  %v243_v40 = vrot.slane %v242_v31, 2  ;;  %v251_v41 = vadd.f32 %v250_v32, %v249_v22  ;;  %v331_v22 = vld [vmem:[%s831_s0 + $0xd8] sm:$0xff] }
  0x32   :  { %v265_v45 = vrot.slane %v264_v35, 4  ;;  %v273_v46 = vadd.f32 %v272_v37, %v271_v36  ;;  %v286_v47 = vsel %vm21_vm2, %v282_v33, 0.0  ;;  %v287_v55 = vsel %vm21_vm2, %v283_v42, 0.0 }
  0x33   :  { %v222_v48 = vadd.f32 %v221_v38, %v220_v29  ;;  %v230_v49 = vrot.slane %v229_v39, 1  ;;  %v244_v50 = vadd.f32 %v243_v40, %v242_v31  ;;  %v252_v51 = vrot.slane %v251_v41, 2  ;;  %v332_v31 = vld [vmem:[%s831_s0 + $0x1d0] sm:$0xff] }
  0x34   :  { %v266_v53 = vadd.f32 %v265_v45, %v264_v35  ;;  %v274_v54 = vrot.slane %v273_v46, 4  ;;  %v295_v56 = vsel %vm21_vm2, %v284_v43, 0.0  ;;  %v209_v57 = vadd.f32 %v207_v34, %v185_v15  ;;  %v333_v34 = vld [vmem:[%s831_s0 + $0x1d8] sm:$0xff]  ;;  %v354_v45 = vld [vmem:[%s831_s0 + $0xe0] sm:$0xff] }
  0x35   :  { %v231_v58 = vadd.f32 %v230_v49, %v229_v39  ;;  %v245_v59 = vrot.slane %v244_v50, 1  ;;  %v253_v60 = vadd.f32 %v252_v51, %v251_v41  ;;  %v288_v0 = vadd.f32 %v287_v55, %v286_v47  ;;  %v356_v55 = vld [vmem:[%s831_s0 + $0x1e0] sm:$0xff] }
  0x36   :  { %v267_v62 = vrot.slane %v266_v53, 2  ;;  %v275_v63 = vadd.f32 %v274_v54, %v273_v46  ;;  %v296_v1 = vsel %vm21_vm2, %v285_v52, 0.0  ;;  %v232_v3 = vadd.f32 %v222_v48, %v208_v44  ;;  %v355_v46 = vld [vmem:[%s831_s0 + $0xe8] sm:$0xff] }
  0x37   :  { %v246_v4 = vadd.f32 %v245_v59, %v244_v50  ;;  %v254_v5 = vrot.slane %v253_v60, 1  ;;  %v297_v6 = vadd.f32 %v296_v1, %v295_v56  ;;  %v289_v9 = vrot.slane %v288_v0, 4  ;;  %v378_v1 = vld [vmem:[%s831_s0 + $0xf0] sm:$0xff] }
  0x38   :  { %v268_v7 = vadd.f32 %v267_v62, %v266_v53  ;;  %v276_v8 = vrot.slane %v275_v63, 2  ;;  %v310_v12 = vsel %vm21_vm2, %v306_v61, 0.0  ;;  %v233_v13 = vadd.f32 %v231_v58, %v209_v57 }
  0x39   :  { %v255_v14 = vadd.f32 %v254_v5, %v253_v60  ;;  %v298_v15 = vrot.slane %v297_v6, 4  ;;  %v311_v16 = vsel %vm21_vm2, %v307_v2, 0.0  ;;  %v290_v19 = vadd.f32 %v289_v9, %v288_v0  ;;  %v357_v0 = vld [vmem:[%s831_s0 + $0x1e8] sm:$0xff] }
  0x3a   :  { %v269_v17 = vrot.slane %v268_v7, 1  ;;  %v277_v18 = vadd.f32 %v276_v8, %v275_v63  ;;  %v312_v20 = vadd.f32 %v311_v16, %v310_v12  ;;  %v256_v23 = vadd.f32 %v246_v4, %v232_v3 }
  0x3b   :  { %v299_v24 = vadd.f32 %v298_v15, %v297_v6  ;;  %v319_v25 = vsel %vm21_vm2, %v308_v10, 0.0  ;;  %v320_v26 = vsel %vm21_vm2, %v309_v11, 0.0  ;;  %v291_v29 = vrot.slane %v290_v19, 2  ;;  %v379_v10 = vld [vmem:[%s831_s0 + $0xf8] sm:$0xff]  ;;  %v380_v11 = vld [vmem:[%s831_s0 + $0x1f0] sm:$0xff] }
  0x3c   :  { %v270_v27 = vadd.f32 %v269_v17, %v268_v7  ;;  %v278_v28 = vrot.slane %v277_v18, 1  ;;  %v313_v30 = vrot.slane %v312_v20, 4  ;;  %v321_v33 = vadd.f32 %v320_v26, %v319_v25 }
  0x3d   :  { %v300_v32 = vrot.slane %v299_v24, 2  ;;  %v334_v35 = vsel %vm21_vm2, %v330_v21, 0.0  ;;  %v335_v36 = vsel %vm21_vm2, %v331_v22, 0.0  ;;  %v257_v37 = vadd.f32 %v255_v14, %v233_v13 }
  0x3e   :  { %v279_v38 = vadd.f32 %v278_v28, %v277_v18  ;;  %v292_v39 = vadd.f32 %v291_v29, %v290_v19  ;;  %v314_v40 = vadd.f32 %v313_v30, %v312_v20  ;;  %v322_v42 = vrot.slane %v321_v33, 4  ;;  %v381_v20 = vld [vmem:[%s831_s0 + $0x1f8] sm:$0xff]  ;;  %s543_s0 = smov [#allocation3]  }
  0x3f   :  { %v301_v41 = vadd.f32 %v300_v32, %v299_v24  ;;  %v336_v43 = vadd.f32 %v335_v36, %v334_v35  ;;  %v343_v44 = vsel %vm21_vm2, %v332_v31, 0.0  ;;  %v280_v47 = vadd.f32 %v270_v27, %v256_v23  ;;  %s497_s22 = sshll.u32 %s543_s0, 4  ;;  %s498_s22 = int_to_ptr.vmem [resolvable:$true] %s497_s22 }
  0x40   :  { %v293_v48 = vrot.slane %v292_v39, 1  ;;  %v315_v49 = vrot.slane %v314_v40, 2  ;;  %v344_v50 = vsel %vm21_vm2, %v333_v34, 0.0  ;;  %v323_v52 = vadd.f32 %v322_v42, %v321_v33  ;;  %s517_s23 = scalar_lea.vmem %s498_s22, 32  ;;  %p522_p1 = scmp.lt.s32.totalorder %s498_s22, %s498_s22 }
  0x41   :  { %v302_v51 = vrot.slane %v301_v41, 1  ;;  %v337_v53 = vrot.slane %v336_v43, 4  ;;  %v345_v54 = vadd.f32 %v344_v50, %v343_v44  ;;  %v358_v58 = vsel %vm21_vm2, %v354_v45, 0.0  ;;  %p518_p0 = scmp.ne.s32.totalorder %s498_s22, %s517_s23  ;;  %p523_p2 = scmp.lt.s32.totalorder %s517_s23, %s517_s23 }
  0x42   :  { %v294_v56 = vadd.f32 %v293_v48, %v292_v39  ;;  %v316_v57 = vadd.f32 %v315_v49, %v314_v40  ;;  %v359_v59 = vsel %vm21_vm2, %v355_v46, 0.0  ;;  %v281_v60 = vadd.f32 %v279_v38, %v257_v37 }
  0x43   :  { %v324_v61 = vrot.slane %v323_v52, 2  ;;  %v338_v62 = vadd.f32 %v337_v53, %v336_v43  ;;  %v346_v63 = vrot.slane %v345_v54, 4  ;;  %v303_v2 = vadd.f32 %v302_v51, %v301_v41  ;;  %p524_p3 = por %p523_p2, %p522_p1 }
  0x44   :  { %v317_v3 = vrot.slane %v316_v57, 1  ;;  %v360_v4 = vadd.f32 %v359_v59, %v358_v58  ;;  %v367_v5 = vsel %vm21_vm2, %v356_v55, 0.0  ;;  %v304_v6 = vadd.f32 %v294_v56, %v280_v47 }
  0x45   :  { %v325_v7 = vadd.f32 %v324_v61, %v323_v52  ;;  %v339_v8 = vrot.slane %v338_v62, 2  ;;  %v347_v9 = vadd.f32 %v346_v63, %v345_v54  ;;  %v368_v14 = vsel %vm21_vm2, %v357_v0, 0.0  ;;  %p525_p4 = pnand %p524_p3, %p518_p0 }
  0x46   :  { %v318_v12 = vadd.f32 %v317_v3, %v316_v57  ;;  %v361_v13 = vrot.slane %v360_v4, 4  ;;  %v382_v15 = vsel %vm21_vm2, %v378_v1, 0.0  ;;  %v369_v19 = vadd.f32 %v368_v14, %v367_v5  ;;  %v402_v1 = vld [vmem:[#allocation2] sm:$0x3] }
  0x47   :  { %v326_v16 = vrot.slane %v325_v7, 1  ;;  %v340_v17 = vadd.f32 %v339_v8, %v338_v62  ;;  %v348_v18 = vrot.slane %v347_v9, 2  ;;  %v305_v21 = vadd.f32 %v303_v2, %v281_v60 }
  0x48   :  { %v362_v22 = vadd.f32 %v361_v13, %v360_v4  ;;  %v383_v23 = vsel %vm21_vm2, %v379_v10, 0.0  ;;  %v391_v24 = vsel %vm21_vm2, %v380_v11, 0.0  ;;  %v370_v28 = vrot.slane %v369_v19, 4 }
  0x49   :  { %v327_v25 = vadd.f32 %v326_v16, %v325_v7  ;;  %v341_v26 = vrot.slane %v340_v17, 1  ;;  %v349_v27 = vadd.f32 %v348_v18, %v347_v9  ;;  %v384_v30 = vadd.f32 %v383_v23, %v382_v15 }
  0x4a   :  { %v363_v29 = vrot.slane %v362_v22, 2  ;;  %v392_v31 = vsel %vm21_vm2, %v381_v20, 0.0  ;;  %v328_v32 = vadd.f32 %v318_v12, %v304_v6  ;;  %v371_v34 = vadd.f32 %v370_v28, %v369_v19 }
  0x4b   :  { %v350_v33 = vrot.slane %v349_v27, 1  ;;  %v342_v35 = vadd.f32 %v341_v26, %v340_v17  ;;  %v385_v37 = vrot.slane %v384_v30, 4  ;;  %v393_v38 = vadd.f32 %v392_v31, %v391_v24 }
  0x4c   :  { %v364_v36 = vadd.f32 %v363_v29, %v362_v22  ;;  %v329_v39 = vadd.f32 %v327_v25, %v305_v21  ;;  %v372_v40 = vrot.slane %v371_v34, 2  ;;  %vm406_vm3 = vcmask 1041409  }
  0x4d   :  { %v351_v41 = vadd.f32 %v350_v33, %v349_v27  ;;  %v386_v43 = vadd.f32 %v385_v37, %v384_v30  ;;  %v394_v44 = vrot.slane %v393_v38, 4  ;;  %v352_v46 = vadd.f32 %v342_v35, %v328_v32 }
  0x4e   :  { %v365_v42 = vrot.slane %v364_v36, 1  ;;  %v373_v45 = vadd.f32 %v372_v40, %v371_v34 }
  0x4f   :  { %v387_v48 = vrot.slane %v386_v43, 2  ;;  %v395_v49 = vadd.f32 %v394_v44, %v393_v38  ;;  %v353_v51 = vadd.f32 %v351_v41, %v329_v39 }
  0x50   :  { %v366_v47 = vadd.f32 %v365_v42, %v364_v36  ;;  %v374_v50 = vrot.slane %v373_v45, 1 }
  0x51   :  { %v388_v52 = vadd.f32 %v387_v48, %v386_v43  ;;  %v396_v53 = vrot.slane %v395_v49, 2 }
  0x52   :  { %v375_v54 = vadd.f32 %v374_v50, %v373_v45  ;;  %v376_v55 = vadd.f32 %v366_v47, %v352_v46 }
  0x53   :  { %v389_v56 = vrot.slane %v388_v52, 1  ;;  %v397_v57 = vadd.f32 %v396_v53, %v395_v49 }
  0x54   :  { %v377_v58 = vadd.f32 %v375_v54, %v353_v51 }
  0x55   :  { %v390_v59 = vadd.f32 %v389_v56, %v388_v52  ;;  %v398_v60 = vrot.slane %v397_v57, 1 }
  0x57   :  { %v399_v61 = vadd.f32 %v398_v60, %v397_v57  ;;  %v400_v62 = vadd.f32 %v390_v59, %v376_v55 }
  0x59   :  { %v401_v63 = vadd.f32 %v399_v61, %v377_v58 }
  0x5b   :  { %v407_v0 = vsel %vm406_vm3, %v401_v63, %v400_v62 }
  0x5c   :  { %512 = vmatmul.mubr.msk.f32.vlgmr.msra.gmra.mrb[0].mxu0 %vm21_vm2, %v407_v0 }
 0x12f   :  { %v480_v2 = vpop.f32.mrb[0].mxu0 }
 0x130   :  { %v484_v3 = vadd.f32 %v480_v2, %v402_v1  ;;  %v513_v4 = vpop.f32.mrb[1].mxu0 }
 0x132   :  { %485 = vst [vmem:[#allocation2] sm:$0x3] %v484_v3 }
 0x139   :  { %v489_v5 = vld [vmem:[#allocation2] sm:$0x3] }
 0x13a   :  { %490 = vst [vmem:[#allocation3] sm:$0x3] %v489_v5 }
 0x13b   :  { %528 = shalt.err (!%p525_p4)
}
 0x13c   :  { %s529_s26 = scalar_lea.hbm %s833_s2, 32 }
 0x13d   :  { %p530_p5 = scmp.ne.s32.totalorder %s833_s2, %s529_s26  ;;  %p533_p6 = scmp.lt.u32.totalorder %s529_s26, %s833_s2 }
 0x13f   :  { %p535_p7 = pnand %p533_p6, %p530_p5 }
 0x141   :  { %538 = shalt.err (!%p535_p7)
}
 0x142   :  { %500 = dma.vmem_to_hbm [thread:$0]  %s498_s22, 32, %s833_s2, [#allocation4]  }
 0x143   :  { %539 = dma.done.wait [#allocation4], 32  }
 0x144   :  { %540 = vsyncadd [#allocation4], 4294967264 }
 0x145   :  { %504 = vsyncpa [#allocation4], 1 }

</bundles_post_ra>
